<compile_context>
chip_gen: v5e
topology: v5e:2x2
jax: 0.10.0
libtpu: 0.0.40
codegen_flags: <defaults>
</compile_context>

<pallas_src>
import jax
import jax.numpy as jnp
from jax.experimental import pallas as pl
from jax.experimental.pallas import tpu as pltpu


# ----------------------------------------------------------------------------
# Synthetic deterministic Mapping (stands in for rsl_rl's Mapping class).
# map[key] = (description, index_list); map[key][1] gives the action indices.
# One empty group exercises the zero_token branch.
# ----------------------------------------------------------------------------
class Mapping:
    def __init__(self, name):
        self.name = name
        # a1-style quadruped: 4 legs x 3 joints = action_dim 12, plus an
        # empty "gripper" group (no action dims) -> zero_token path.
        self._map = {
            "FL": ("front_left_leg", [0, 1, 2]),
            "FR": ("front_right_leg", [3, 4, 5]),
            "RL": ("rear_left_leg", [6, 7, 8]),
            "RR": ("rear_right_leg", [9, 10, 11]),
            "gripper": ("no_actuators", []),
        }

    def get_map(self):
        return self._map

    def create_action(self, x):
        # x: (batch, action_dim) -> dict key -> (batch, len(idx))
        out = {}
        for k, (_, idx) in self._map.items():
            if len(idx) == 0:
                out[k] = x[..., :0]
            else:
                out[k] = x[..., jnp.asarray(idx, dtype=jnp.int32)]
        return out


# ----------------------------------------------------------------------------
# Pallas kernel: one (TILE_B, K) @ (K, GO_pad) matmul, bias folded in as the
# last row of the packed weight buffer.
# ----------------------------------------------------------------------------
def _tokenizer_kernel(x_ref, w_ref, o_ref):
    K = x_ref.shape[-1]
    x = x_ref[...].astype(jnp.float32)          # cast in-kernel (free on VPU)
    w = w_ref[...]                              # (K+1, GO_pad) f32
    y = jnp.dot(x, w[:K, :], preferred_element_type=jnp.float32)
    y = y + w[K:K + 1, :]                       # bias row, broadcast over B
    o_ref[...] = y.astype(o_ref.dtype)


def _round_up(v, m):
    return ((v + m - 1) // m) * m


@jax.jit
def _tokenize_pallas(x, w_packed):
    B, K = x.shape
    Kp1, GO_pad = w_packed.shape              # (K+1, padded group*output width)

    # Batch tiling: single tile for small B; 512-row parallel tiles otherwise.
    TILE_B = 512 if B > 512 else _round_up(max(B, 8), 8)
    B_pad = _round_up(B, TILE_B)
    if B_pad != B:
        x = jnp.pad(x, ((0, B_pad - B), (0, 0)))

    out = pl.pallas_call(
        _tokenizer_kernel,
        out_shape=jax.ShapeDtypeStruct((B_pad, GO_pad), jnp.float32),
        grid=(B_pad // TILE_B,),
        in_specs=[
            pl.BlockSpec((TILE_B, K), lambda i: (i, 0)),
            pl.BlockSpec((Kp1, GO_pad), lambda i: (0, 0)),   # resident weights
        ],
        out_specs=pl.BlockSpec((TILE_B, GO_pad), lambda i: (i, 0)),
        compiler_params=pltpu.CompilerParams(
            dimension_semantics=("parallel",),
            vmem_limit_bytes=32 * 1024 * 1024,
        ),
    )(x, w_packed)
    return out[:B]


# ----------------------------------------------------------------------------
# ActionTokenizer wrapper (parameters built deterministically in-script)
# ----------------------------------------------------------------------------
class ActionTokenizer:
    def __init__(self, name, output_dim, action_dim, key):
        self.mapping = Mapping(name)
        self.map = self.mapping.get_map()
        self.output_dim = output_dim
        self.action_dim = action_dim
        self.keys = list(self.map.keys())
        self.num_groups = len(self.keys)
        self.group_idx = [self.map[k][1] for k in self.keys]

        G, O, K = self.num_groups, output_dim, action_dim
        GO = G * O
        GO_pad = _round_up(GO, 128)           # 160 -> 256: lane-dense stores
        self.go = GO
        self.go_pad = GO_pad

        # zero_token (frozen at zero, like the PyTorch nn.Parameter).
        self.zero_token = jnp.zeros((1, O), jnp.float32)

        # Packed buffer: rows 0..K-1 = scattered group weights,
        # row K = packed biases (zero_token for empty groups).
        W_packed = jnp.zeros((K + 1, GO_pad), jnp.float32)
        self.W_groups = []
        self.b_groups = []
        for g, idx in enumerate(self.group_idx):
            d = len(idx)
            c0, c1 = g * O, (g + 1) * O
            if d == 0:
                self.W_groups.append(None)
                self.b_groups.append(None)
                # Empty group -> zero_token goes into the bias row.
                W_packed = W_packed.at[K, c0:c1].set(self.zero_token[0])
                continue
            key, kw, kb = jax.random.split(key, 3)
            bound = 1.0 / jnp.sqrt(float(d))
            wg = jax.random.uniform(kw, (d, O), jnp.float32,
                                    minval=-bound, maxval=bound)
            bg = jax.random.uniform(kb, (1, O), jnp.float32,
                                    minval=-bound, maxval=bound)
            self.W_groups.append(wg)
            self.b_groups.append(bg)
            idx_arr = jnp.asarray(idx, dtype=jnp.int32)
            W_packed = W_packed.at[idx_arr, c0:c1].set(wg)
            W_packed = W_packed.at[K, c0:c1].set(bg[0])
        self.W_packed = W_packed

    def forward(self, x):
        # Single fused kernel: (B, K) @ (K, GO_pad) + bias -> slice + reshape.
        out_flat = _tokenize_pallas(x, self.W_packed)
        B = x.shape[0]
        return out_flat[:, :self.go].reshape(B, self.num_groups,
                                             self.output_dim)

    def reference(self, x):
        # Pure-JAX reference mimicking the PyTorch forward (per-group linears,
        # zero_token for empty groups).
        groups = self.mapping.create_action(x)
        outs = []
        for g, k in enumerate(self.keys):
            inp = groups[k].astype(jnp.float32)
            if inp.shape[-1] == 0:
                tok = jnp.broadcast_to(self.zero_token,
                                       (x.shape[0], self.output_dim))
                outs.append(tok[:, None, :])
            else:
                y = inp @ self.W_groups[g] + self.b_groups[g]
                outs.append(y[:, None, :])
        return jnp.concatenate(outs, axis=1)


if __name__ == "__main__":
    key = jax.random.PRNGKey(0)
    k_param, k_x = jax.random.split(key)

    batch = 8
    action_dim = 12
    output_dim = 32

    tok = ActionTokenizer("a1", output_dim=output_dim,
                          action_dim=action_dim, key=k_param)

    x = jax.random.normal(k_x, (batch, action_dim), jnp.float32)

    out = tok.forward(x)
    out = jax.block_until_ready(out)

    ref = tok.reference(x)
    assert out.shape == (batch, tok.num_groups, output_dim), out.shape
    assert jnp.allclose(out, ref, atol=1e-5, rtol=1e-5), \
        float(jnp.max(jnp.abs(out - ref)))

    print("KERNEL_OK")
</pallas_src>

<mosaic_0001>
module attributes {stable_mosaic.version = 11 : i64} {
  func.func @_tokenizer_kernel(%arg0: i32, %arg1: memref<8x12xf32, #tpu.memory_space<vmem>>, %arg2: memref<13x256xf32, #tpu.memory_space<vmem>>, %arg3: memref<8x256xf32, #tpu.memory_space<vmem>>) attributes {dimension_semantics = [#tpu.dimension_semantics<parallel>], iteration_bounds = array<i64: 1>, scalar_prefetch = 0 : i64, scratch_operands = 0 : i64, tpu.core_type = #tpu.core_type<tc>, window_params = [{transform_indices = @transform_0, window_bounds = array<i64: 8, 12>}, {pipeline_mode = #tpu.pipeline_mode<synchronous>, transform_indices = @transform_1, window_bounds = array<i64: 13, 256>}, {transform_indices = @transform_2, window_bounds = array<i64: 8, 256>}]} {
    %c0 = arith.constant 0 : index
    %c0_0 = arith.constant 0 : index
    %0 = vector.load %arg1[%c0, %c0_0] : memref<8x12xf32, #tpu.memory_space<vmem>>, vector<8x12xf32>
    %c0_1 = arith.constant 0 : index
    %c0_2 = arith.constant 0 : index
    %1 = vector.load %arg2[%c0_1, %c0_2] : memref<13x256xf32, #tpu.memory_space<vmem>>, vector<13x256xf32>
    %2 = vector.extract_strided_slice %1 {offsets = [0, 0], sizes = [12, 256], strides = [1, 1]} : vector<13x256xf32> to vector<12x256xf32>
    %cst = arith.constant dense<0.000000e+00> : vector<8x256xf32>
    %3 = tpu.matmul %0, %2, %cst {dimension_numbers = #tpu.dot_dimension_numbers<[1], [0], [0], [1], [0, 0, 1, 1], [], []>} : vector<8x12xf32>, vector<12x256xf32>, vector<8x256xf32> -> vector<8x256xf32>
    %4 = vector.extract_strided_slice %1 {offsets = [12, 0], sizes = [1, 256], strides = [1, 1]} : vector<13x256xf32> to vector<1x256xf32>
    %5 = vector.broadcast %4 : vector<1x256xf32> to vector<8x256xf32>
    %6 = arith.addf %3, %5 : vector<8x256xf32>
    %c0_3 = arith.constant 0 : index
    %c0_4 = arith.constant 0 : index
    %7 = vector.load %arg3[%c0_3, %c0_4] : memref<8x256xf32, #tpu.memory_space<vmem>>, vector<8x256xf32>
    tpu.vector_store %arg3[%c0_3, %c0_4], %6 {strides = array<i32>} : memref<8x256xf32, #tpu.memory_space<vmem>>, vector<8x256xf32>,
    return
  }
  func.func @transform_0(%arg0: i32) -> (i32, i32) {
    %c0_i32 = arith.constant 0 : i32
    %c0_i32_0 = arith.constant 0 : i32
    return %arg0, %c0_i32 : i32, i32
  }
  func.func @transform_1(%arg0: i32) -> (i32, i32) {
    %c0_i32 = arith.constant 0 : i32
    %c0_i32_0 = arith.constant 0 : i32
    %c0_i32_1 = arith.constant 0 : i32
    return %c0_i32, %c0_i32_0 : i32, i32
  }
  func.func @transform_2(%arg0: i32) -> (i32, i32) {
    %c0_i32 = arith.constant 0 : i32
    %c0_i32_0 = arith.constant 0 : i32
    return %arg0, %c0_i32 : i32, i32
  }
}

</mosaic_0001>

<bundles_post_ra>
// kernel: _tokenize_pallas.1
= control target key start
LH: loop header
LB: loop body
LE: loop exit
PB: predicated region body
PF: predicated region fallthrough
CT: control target
= control target key end

     0   :  { %7 = vsyncpa [#allocation3], 0  ;;  %s236_s0 = inlined_call_operand.hbm [shape: f32[8,12], index: 0, kind: input, shape index: {}]   ;;  %s237_s1 = inlined_call_operand.hbm [shape: f32[13,256], index: 1, kind: input, shape index: {}]   ;;  %s238_s2 = inlined_call_operand.hbm [shape: f32[8,256], index: 2, kind: output, shape index: {}]  }
   0x1   :  { %8 = vsyncpa [#allocation6], 0 }
   0x2   :  { %9 = vsyncpa [#allocation4], 0  ;;  %s15_s11 = sshll.u32 %s236_s0, 4  ;;  %s207_s12 = smov [#allocation2]   ;;  %s16_s11 = int_to_ptr.hbm [resolvable:$true] %s15_s11 }
   0x3   :  { %s17_s13 = sshll.u32 %s207_s12, 4  ;;  %s25_s16 = sshll.u32 %s237_s1, 4  ;;  %s18_s13 = int_to_ptr.vmem [resolvable:$true] %s17_s13  ;;  %s26_s16 = int_to_ptr.hbm [resolvable:$true] %s25_s16 }
   0x4   :  { %20 = dma.hbm_to_vmem [thread:$0]  %s16_s11, 128, %s18_s13, [#allocation3]  }
   0x5   :  { %s208_s17 = smov [#allocation5]   ;;  %s209_s19 = smov 256  }
   0x6   :  { %s27_s18 = sshll.u32 %s208_s17, 4  ;;  %s210_s20 = smov 16   ;;  %s28_s18 = int_to_ptr.vmem [resolvable:$true] %s27_s18 }
   0x7   :  { %33 = dma.hbm_to_vmem [thread:$0]  %s26_s16, 512, %s28_s18, [#allocation6], %s209_s19, %s209_s19, %s210_s20  }
   0x8   :  { %201 = dma.done.wait [#allocation3], 128  }
   0x9   :  { %202 = vsyncadd [#allocation3], 4294967168 }
   0xa   :  { %203 = dma.done.wait [#allocation6], 512  }
   0xb   :  { %204 = vsyncadd [#allocation6], 4294966784  ;;  %vm53_vm0 = vcmask 1043456   ;;  %v45_v0 = vld [vmem:[#allocation5 + $0x10] sm:$0x1f]  ;;  %v43_v2 = vld [vmem:[#allocation5] sm:$0xff] }
   0xc   :  { %v46_v1 = vld [vmem:[#allocation5 + $0x18] sm:$0x1f]  ;;  %120 = vmatpush.msk.msra.mxu0 %vm53_vm0, %v45_v0  ;;  %v44_v3 = vld [vmem:[#allocation5 + $0x8] sm:$0xff]  ;;  %vm49_vm1 = vcmask 97280   ;;  %v47_v5 = vperm.slane %v45_v0, 4  ;;  %s211_s0 = smov [#allocation7]  }
   0xd   :  { %122 = vmatpush.msk.msra.mxu1 %vm53_vm0, %v46_v1  ;;  %v42_v4 = vld [vmem:[#allocation2] sm:$0xff]  ;;  %v48_v6 = vperm.slane %v46_v1, 4  ;;  %s107_s1 = sshll.u32 %s211_s0, 4  ;;  %s109_s23 = sshll.u32 %s238_s2, 4  ;;  %s108_s1 = int_to_ptr.vmem [resolvable:$true] %s107_s1  ;;  %s110_s23 = int_to_ptr.hbm [resolvable:$true] %s109_s23 }
   0xe   :  { %75 = vmatpush.msra.mxu0 %v43_v2 }
   0xf   :  { %95 = vmatpush.msra.mxu1 %v44_v3  ;;  %121 = vmatmul.msk.f32.vlgmr.msra.gmra.mxu0 %vm49_vm1, %v42_v4 }
  0x10   :  { %123 = vmatmul.msk.f32.vlgmr.msra.gmra.mxu1 %vm49_vm1, %v42_v4 }
  0x8c   :  { %v77_v7 = vpop.f32.mrf.mxu0 }
  0x8d   :  { %v97_v8 = vpop.f32.mrf.mxu1  ;;  %v78_v9 = vadd.f32 %v77_v7, %v47_v5 }
  0x8e   :  { %v98_v10 = vadd.f32 %v97_v8, %v48_v6 }
  0x8f   :  { %100 = vst [vmem:[#allocation7] sm:$0xff] %v78_v9 }
  0x90   :  { %101 = vst [vmem:[#allocation7 + $0x8] sm:$0xff] %v98_v10 }
  0x91   :  { %112 = dma.vmem_to_hbm [thread:$0]  %s108_s1, 256, %s110_s23, [#allocation4]  }
  0x92   :  { %205 = dma.done.wait [#allocation4], 256  }
  0x93   :  { %206 = vsyncadd [#allocation4], 4294967040 }
  0x94   :  { %117 = vsyncpa [#allocation3], 1 }
  0x95   :  { %118 = vsyncpa [#allocation6], 1 }
  0x96   :  { %119 = vsyncpa [#allocation4], 1 }

</bundles_post_ra>
